<compile_context>
chip_gen: v5e
topology: v5e:2x2
jax: 0.10.0
libtpu: 0.0.40
codegen_flags: <defaults>
</compile_context>

<pallas_src>
from dataclasses import dataclass
from typing import Optional

import jax
import jax.numpy as jnp
from jax.experimental import pallas as pl
from jax.experimental.pallas import tpu as pltpu


@dataclass
class ActorCriticConfig:
    feature_dim: int
    hidden_dim: int
    img_size: int
    depth: int = 3
    type: str = None
    num_actions: Optional[int] = None
    num_states: Optional[int] = None
    is_continuous_action: Optional[bool] = True
    acitive_fn: Optional[str] = "relu"
    online_lr: Optional[float] = 3e-06
    frame_stack: Optional[int] = 1
    image_size: Optional[int] = 96
    use_trunk: Optional[bool] = True
    trunk_ln: Optional[bool] = False
    trunk_activation: Optional[str] = "relu"
    critic_ln: Optional[bool] = False


@dataclass
class ActorCriticLossConfig:
    backup_every: int
    gamma: float
    lambda_: float
    weight_value_loss: float
    weight_entropy_loss: float
    weight_bc_loss: float
    is_continuous_action: bool = True


# ---------------------------------------------------------------------------
# helpers
# ---------------------------------------------------------------------------
def _round_up(x: int, m: int) -> int:
    return ((x + m - 1) // m) * m


def _pad2(a, rows: int, cols: int):
    r, c = a.shape
    if r == rows and c == cols:
        return a
    return jnp.pad(a, ((0, rows - r), (0, cols - c)))


# ---------------------------------------------------------------------------
# Pallas kernels: trunk = relu(x @ W + b), tiled over (M, N, K)
# ---------------------------------------------------------------------------
def _trunk_kernel_f32_out(x_ref, w_ref, b_ref, o_ref):
    # f32 output: accumulate directly into the resident output block
    # (same (i, j) block across the whole K axis) — no scratch, no epilogue
    # copy.
    k = pl.program_id(2)
    partial = jnp.dot(x_ref[...], w_ref[...], preferred_element_type=jnp.float32)

    @pl.when(k == 0)
    def _():
        o_ref[...] = partial

    @pl.when(k > 0)
    def _():
        o_ref[...] = o_ref[...] + partial

    @pl.when(k == pl.num_programs(2) - 1)
    def _():
        o_ref[...] = jnp.maximum(o_ref[...] + b_ref[...], 0.0)


def _trunk_kernel_scratch(x_ref, w_ref, b_ref, o_ref, acc_ref):
    # Narrow-output (e.g. bf16) path: f32 accumulation in VMEM scratch,
    # bias + relu + downcast once in the epilogue.
    k = pl.program_id(2)

    @pl.when(k == 0)
    def _():
        acc_ref[...] = jnp.zeros_like(acc_ref)

    acc_ref[...] += jnp.dot(
        x_ref[...], w_ref[...], preferred_element_type=jnp.float32
    )

    @pl.when(k == pl.num_programs(2) - 1)
    def _():
        z = acc_ref[...] + b_ref[...]
        o_ref[...] = jnp.maximum(z, 0.0).astype(o_ref.dtype)


def trunk_forward(
    x,
    w_padded,
    b_padded,
    *,
    hidden_dim: int,
    tn: int,
    tk: int,
    out_dtype=jnp.float32,
    tm_max: int = 512,
    vmem_limit_bytes: int = 32 << 20,
):
    """relu(x @ W + b) as a tiled Pallas TPU matmul.

    x:        [B, F] float (any float dtype; cast to bf16 for the MXU)
    w_padded: [Fp, Hp] bf16, pre-padded so Fp % tk == 0 and Hp % tn == 0
    b_padded: [1, Hp]  f32, pre-padded
    Returns [B, hidden_dim] out_dtype.  Zero K-padding contributes nothing to
    the dot product, so numerics match (up to bf16 input rounding).
    """
    B, F = x.shape
    Fp, Hp = w_padded.shape
    assert b_padded.shape == (1, Hp)
    assert F <= Fp and hidden_dim <= Hp
    assert Fp % tk == 0 and Hp % tn == 0

    # Pad only the activations per call (weights/bias are already cached).
    Bp = _round_up(B, 16)                 # bf16 sublane packing
    tm = min(tm_max, Bp)                  # one M tile whenever the batch fits
    Bp = _round_up(Bp, tm)
    xp = _pad2(x, Bp, Fp).astype(jnp.bfloat16)

    grid = (Bp // tm, Hp // tn, Fp // tk)  # reduction (K) axis last

    out_bytes = Bp * Hp * jnp.dtype(out_dtype).itemsize
    cost = pl.CostEstimate(
        flops=2 * Bp * Fp * Hp,
        transcendentals=0,
        bytes_accessed=xp.size * 2 + w_padded.size * 2 + b_padded.size * 4
        + out_bytes,
    )

    f32_out = jnp.dtype(out_dtype) == jnp.dtype(jnp.float32)
    kernel = _trunk_kernel_f32_out if f32_out else _trunk_kernel_scratch
    scratch_shapes = [] if f32_out else [pltpu.VMEM((tm, tn), jnp.float32)]

    out_padded = pl.pallas_call(
        kernel,
        out_shape=jax.ShapeDtypeStruct((Bp, Hp), out_dtype),
        grid_spec=pltpu.PrefetchScalarGridSpec(
            num_scalar_prefetch=0,
            grid=grid,
            in_specs=[
                pl.BlockSpec((tm, tk), lambda i, j, k: (i, k)),
                pl.BlockSpec((tk, tn), lambda i, j, k: (k, j)),
                pl.BlockSpec((1, tn), lambda i, j, k: (0, j)),
            ],
            out_specs=pl.BlockSpec((tm, tn), lambda i, j, k: (i, j)),
            scratch_shapes=scratch_shapes,
        ),
        compiler_params=pltpu.CompilerParams(
            dimension_semantics=("parallel", "parallel", "arbitrary"),
            vmem_limit_bytes=vmem_limit_bytes,
        ),
        cost_estimate=cost,
    )(xp, w_padded, b_padded)

    if Bp == B and Hp == hidden_dim:
        return out_padded                 # no padded-output round trip
    return out_padded[:B, :hidden_dim]


# ---------------------------------------------------------------------------
# JAX-side BaseAgent mirror
# ---------------------------------------------------------------------------
class BaseAgent:
    def __init__(self, cfg: ActorCriticConfig) -> None:
        self.feature_dim = cfg.feature_dim
        self.hidden_dim = cfg.hidden_dim
        self.loss_cfg = None
        self.cfg = cfg

        # Deterministic synthetic trunk parameters (Kaiming-ish scale).
        key = jax.random.PRNGKey(0)
        kw, kb = jax.random.split(key)
        scale = 1.0 / jnp.sqrt(jnp.float32(cfg.feature_dim))
        self.w = (jax.random.normal(kw, (cfg.feature_dim, cfg.hidden_dim),
                                    dtype=jnp.float32) * scale)
        self.b = (jax.random.normal(kb, (1, cfg.hidden_dim),
                                    dtype=jnp.float32) * 0.01)

        # --- one-time tile selection + weight padding/cast (cached) ---------
        Fp = _round_up(cfg.feature_dim, 128)
        Hp = _round_up(cfg.hidden_dim, 128)

        # K tile: whole (padded) feature dim when it fits, else 2048 chunks.
        tk = min(2048, Fp)
        Fp = _round_up(Fp, tk)

        # N tile: lane-dense, and >= 2 N-iterations when Hp >= 256 so both
        # v7x TensorCores get parallel work even when M_tiles == 1.
        tn = min(512, Hp)
        if Hp >= 256 and Hp // tn < 2:
            tn = max(128, (Hp // 2) // 128 * 128)
        Hp = _round_up(Hp, tn)

        self._tk, self._tn = tk, tn
        self._Fp, self._Hp = Fp, Hp
        # Cached kernel-ready operands: bf16 weights, f32 bias, pre-padded.
        self._w_padded = _pad2(self.w, Fp, Hp).astype(jnp.bfloat16)
        self._b_padded = _pad2(self.b, 1, Hp).astype(jnp.float32)

    def trunk(self, obs_features, out_dtype=jnp.float32, force_pallas=False):
        """relu(obs_features @ W + b).

        Small / degenerate problems (fit a single 128x128 MXU pass) use plain
        XLA, which beats the pallas_call fixed cost; everything else goes
        through the Pallas kernel.  bf16-cast inputs, f32 accumulation.
        """
        B, F = obs_features.shape
        tiny = (B * F * self.hidden_dim) <= (128 * 128 * 128)
        if tiny and not force_pallas:
            z = obs_features.astype(jnp.float32) @ self.w + self.b
            return jnp.maximum(z, 0.0).astype(out_dtype)
        return trunk_forward(
            obs_features,
            self._w_padded,
            self._b_padded,
            hidden_dim=self.hidden_dim,
            tn=self._tn,
            tk=self._tk,
            out_dtype=out_dtype,
        )

    def predict_act(self, obs, eval_mode=False):
        raise NotImplementedError

    def forward(self, rb, batch=None):
        raise NotImplementedError

    def update(self, rb, batch=None):
        raise NotImplementedError

    def setup_training(self, loss_cfg: ActorCriticLossConfig) -> None:
        assert self.loss_cfg is None
        self.loss_cfg = loss_cfg


# ---------------------------------------------------------------------------
if __name__ == "__main__":
    cfg = ActorCriticConfig(feature_dim=32, hidden_dim=32, img_size=16)
    agent = BaseAgent(cfg)

    key = jax.random.PRNGKey(0)
    obs_features = jax.random.normal(key, (8, cfg.feature_dim),
                                     dtype=jnp.float32)

    # Force the Pallas path so the kernel itself is exercised even at this
    # tiny test shape (the auto fast path would otherwise bypass it).
    out = agent.trunk(obs_features, force_pallas=True)
    jax.block_until_ready(out)

    # Cross-check against plain-JAX reference (bf16 inputs, f32 accumulate
    # inside the kernel -> loosened tolerance vs. the full-f32 reference).
    ref = jnp.maximum(obs_features @ agent.w + agent.b, 0.0)
    assert out.shape == (8, cfg.hidden_dim)
    assert out.dtype == jnp.float32
    assert jnp.allclose(out, ref, atol=1e-2, rtol=1e-2)

    # Also exercise the bf16-output (scratch accumulator) kernel variant.
    out_bf16 = agent.trunk(obs_features, out_dtype=jnp.bfloat16,
                           force_pallas=True)
    jax.block_until_ready(out_bf16)
    assert out_bf16.dtype == jnp.bfloat16
    assert jnp.allclose(out_bf16.astype(jnp.float32), ref, atol=5e-2, rtol=5e-2)

    print("KERNEL_OK")
</pallas_src>

<mosaic_0001>
module attributes {stable_mosaic.version = 11 : i64} {
  func.func @_trunk_kernel_f32_out(%arg0: i32, %arg1: i32, %arg2: i32, %arg3: memref<16x128xbf16, #tpu.memory_space<vmem>>, %arg4: memref<128x128xbf16, #tpu.memory_space<vmem>>, %arg5: memref<1x128xf32, #tpu.memory_space<vmem>>, %arg6: memref<16x128xf32, #tpu.memory_space<vmem>>) attributes {dimension_semantics = [#tpu.dimension_semantics<parallel>, #tpu.dimension_semantics<parallel>, #tpu.dimension_semantics<arbitrary>], iteration_bounds = array<i64: 1, 1, 1>, scalar_prefetch = 0 : i64, scratch_operands = 0 : i64, tpu.core_type = #tpu.core_type<tc>, window_params = [{transform_indices = @transform_0, window_bounds = array<i64: 16, 128>}, {transform_indices = @transform_1, window_bounds = array<i64: 128, 128>}, {transform_indices = @transform_2, window_bounds = array<i64: 1, 128>}, {transform_indices = @transform_3, window_bounds = array<i64: 16, 128>}]} {
    %c0 = arith.constant 0 : index
    %c0_0 = arith.constant 0 : index
    %0 = vector.load %arg3[%c0, %c0_0] : memref<16x128xbf16, #tpu.memory_space<vmem>>, vector<16x128xbf16>
    %c0_1 = arith.constant 0 : index
    %c0_2 = arith.constant 0 : index
    %1 = vector.load %arg4[%c0_1, %c0_2] : memref<128x128xbf16, #tpu.memory_space<vmem>>, vector<128x128xbf16>
    %cst = arith.constant dense<0.000000e+00> : vector<16x128xf32>
    %2 = tpu.matmul %0, %1, %cst {dimension_numbers = #tpu.dot_dimension_numbers<[1], [0], [0], [1], [0, 0, 1, 1], [], []>} : vector<16x128xbf16>, vector<128x128xbf16>, vector<16x128xf32> -> vector<16x128xf32>
    %c0_i32 = arith.constant 0 : i32
    %3 = arith.cmpi eq, %arg2, %c0_i32 : i32
    %4 = arith.extui %3 : i1 to i32
    %c0_i32_3 = arith.constant 0 : i32
    %5 = arith.cmpi ne, %4, %c0_i32_3 : i32
    scf.if %5 {
      %c0_8 = arith.constant 0 : index
      %c0_9 = arith.constant 0 : index
      %12 = vector.load %arg6[%c0_8, %c0_9] : memref<16x128xf32, #tpu.memory_space<vmem>>, vector<16x128xf32>
      tpu.vector_store %arg6[%c0_8, %c0_9], %2 {strides = array<i32>} : memref<16x128xf32, #tpu.memory_space<vmem>>, vector<16x128xf32>,
    } else {
    }
    %c0_i32_4 = arith.constant 0 : i32
    %6 = arith.cmpi sgt, %arg2, %c0_i32_4 : i32
    %7 = arith.extui %6 : i1 to i32
    %c0_i32_5 = arith.constant 0 : i32
    %8 = arith.cmpi ne, %7, %c0_i32_5 : i32
    scf.if %8 {
      %c0_8 = arith.constant 0 : index
      %c0_9 = arith.constant 0 : index
      %12 = vector.load %arg6[%c0_8, %c0_9] : memref<16x128xf32, #tpu.memory_space<vmem>>, vector<16x128xf32>
      %13 = arith.addf %12, %2 : vector<16x128xf32>
      %c0_10 = arith.constant 0 : index
      %c0_11 = arith.constant 0 : index
      %14 = vector.load %arg6[%c0_10, %c0_11] : memref<16x128xf32, #tpu.memory_space<vmem>>, vector<16x128xf32>
      tpu.vector_store %arg6[%c0_10, %c0_11], %13 {strides = array<i32>} : memref<16x128xf32, #tpu.memory_space<vmem>>, vector<16x128xf32>,
    } else {
    }
    %c0_i32_6 = arith.constant 0 : i32
    %9 = arith.cmpi eq, %arg2, %c0_i32_6 : i32
    %10 = arith.extui %9 : i1 to i32
    %c0_i32_7 = arith.constant 0 : i32
    %11 = arith.cmpi ne, %10, %c0_i32_7 : i32
    scf.if %11 {
      %c0_8 = arith.constant 0 : index
      %c0_9 = arith.constant 0 : index
      %12 = vector.load %arg6[%c0_8, %c0_9] : memref<16x128xf32, #tpu.memory_space<vmem>>, vector<16x128xf32>
      %c0_10 = arith.constant 0 : index
      %c0_11 = arith.constant 0 : index
      %13 = vector.load %arg5[%c0_10, %c0_11] : memref<1x128xf32, #tpu.memory_space<vmem>>, vector<1x128xf32>
      %14 = vector.broadcast %13 : vector<1x128xf32> to vector<16x128xf32>
      %15 = arith.addf %12, %14 : vector<16x128xf32>
      %cst_12 = arith.constant 0.000000e+00 : f32
      %16 = vector.broadcast %cst_12 : f32 to vector<16x128xf32>
      %17 = arith.maximumf %15, %16 : vector<16x128xf32>
      %c0_13 = arith.constant 0 : index
      %c0_14 = arith.constant 0 : index
      %18 = vector.load %arg6[%c0_13, %c0_14] : memref<16x128xf32, #tpu.memory_space<vmem>>, vector<16x128xf32>
      tpu.vector_store %arg6[%c0_13, %c0_14], %17 {strides = array<i32>} : memref<16x128xf32, #tpu.memory_space<vmem>>, vector<16x128xf32>,
    } else {
    }
    return
  }
  func.func @transform_0(%arg0: i32, %arg1: i32, %arg2: i32) -> (i32, i32) {
    %c0_i32 = arith.constant 0 : i32
    return %arg0, %arg2 : i32, i32
  }
  func.func @transform_1(%arg0: i32, %arg1: i32, %arg2: i32) -> (i32, i32) {
    %c0_i32 = arith.constant 0 : i32
    return %arg2, %arg1 : i32, i32
  }
  func.func @transform_2(%arg0: i32, %arg1: i32, %arg2: i32) -> (i32, i32) {
    %c0_i32 = arith.constant 0 : i32
    %c0_i32_0 = arith.constant 0 : i32
    return %c0_i32, %arg1 : i32, i32
  }
  func.func @transform_3(%arg0: i32, %arg1: i32, %arg2: i32) -> (i32, i32) {
    %c0_i32 = arith.constant 0 : i32
    return %arg0, %arg1 : i32, i32
  }
}

</mosaic_0001>

<bundles_post_ra>
// kernel: tpu_custom_call.1
= control target key start
LH: loop header
LB: loop body
LE: loop exit
PB: predicated region body
PF: predicated region fallthrough
CT: control target
= control target key end

     0   :  { %8 = vsyncpa [#allocation3], 0  ;;  %s354_s0 = inlined_call_operand.hbm [shape: bf16[16,128], index: 0, kind: input, shape index: {}]   ;;  %s355_s1 = inlined_call_operand.hbm [shape: bf16[128,128], index: 1, kind: input, shape index: {}]   ;;  %s356_s2 = inlined_call_operand.vmem [shape: f32[1,128], index: 2, kind: input, shape index: {}]   ;;  %s357_s3 = inlined_call_operand.hbm [shape: f32[16,128], index: 3, kind: output, shape index: {}]  }
   0x1   :  { %9 = vsyncpa [#allocation6], 0 }
   0x2   :  { %10 = vsyncpa [#allocation4], 0  ;;  %s15_s14 = sshll.u32 %s354_s0, 4  ;;  %s315_s15 = smov [#allocation2]   ;;  %s16_s14 = int_to_ptr.hbm [resolvable:$true] %s15_s14 }
   0x3   :  { %s17_s16 = sshll.u32 %s315_s15, 4  ;;  %s28_s19 = sshll.u32 %s355_s1, 4  ;;  %s18_s16 = int_to_ptr.vmem [resolvable:$true] %s17_s16  ;;  %s29_s19 = int_to_ptr.hbm [resolvable:$true] %s28_s19 }
   0x4   :  { %s316_s20 = smov 64   ;;  %s317_s21 = smov 4  }
   0x5   :  { %23 = dma.hbm_to_vmem [thread:$0]  %s16_s14, 128, %s18_s16, [#allocation3], %s316_s20, %s316_s20, %s317_s21  }
   0x6   :  { %s318_s22 = smov [#allocation5]  }
   0x7   :  { %s30_s23 = sshll.u32 %s318_s22, 4  ;;  %s31_s23 = int_to_ptr.vmem [resolvable:$true] %s30_s23 }
   0x8   :  { %36 = dma.hbm_to_vmem [thread:$0]  %s29_s19, 1024, %s31_s23, [#allocation6], %s316_s20, %s316_s20, %s317_s21  }
   0x9   :  { %309 = dma.done.wait [#allocation3], 128  }
   0xa   :  { %310 = vsyncadd [#allocation3], 4294967168 }
   0xb   :  { %311 = dma.done.wait [#allocation6], 1024  }
   0xc   :  { %312 = vsyncadd [#allocation6], 4294966272  ;;  %v228_v0 = vld [vmem:[#allocation5 + $0x38] sm:$0xff]  ;;  %v227_v1 = vld [vmem:[#allocation5 + $0x30] sm:$0xff]  ;;  %s319_s24 = smov [#allocation7]   ;;  %s170_s28 = sshll.u32 %s357_s3, 4  ;;  %s171_s28 = int_to_ptr.hbm [resolvable:$true] %s170_s28 }
   0xd   :  { %119 = vmatpush.bf16.msra.mxu0 %v228_v0  ;;  %v226_v2 = vld [vmem:[#allocation5 + $0x28] sm:$0xff]  ;;  %v225_v3 = vld [vmem:[#allocation5 + $0x20] sm:$0xff]  ;;  %v224_v4 = vld [vmem:[#allocation5 + $0x18] sm:$0xff]  ;;  %s168_s25 = sshll.u32 %s319_s24, 4  ;;  %s320_s29 = smov 128   ;;  %s169_s25 = int_to_ptr.vmem [resolvable:$true] %s168_s25 }
   0xe   :  { %v223_v5 = vld [vmem:[#allocation5 + $0x10] sm:$0xff]  ;;  %v222_v6 = vld [vmem:[#allocation5 + $0x8] sm:$0xff]  ;;  %v221_v7 = vld [vmem:[#allocation5] sm:$0xff]  ;;  %s321_s30 = smov 8  }
   0xf   :  { %v220_v8 = vld [vmem:[#allocation2] sm:$0xff] }
  0x10   :  { %v236_v9 = vld [vmem:[%s356_s2] ss:$0 sm:$0xff] }
  0x11   :  { %120 = vmatpush.bf16.msra.mxu0 %v227_v1 }
  0x15   :  { %121 = vmatpush.bf16.msra.mxu0 %v226_v2 }
  0x19   :  { %122 = vmatpush.bf16.msra.mxu0 %v225_v3 }
  0x1d   :  { %123 = vmatpush.bf16.msra.mxu0 %v224_v4 }
  0x21   :  { %124 = vmatpush.bf16.msra.mxu0 %v223_v5 }
  0x25   :  { %125 = vmatpush.bf16.msra.mxu0 %v222_v6 }
  0x29   :  { %126 = vmatpush.bf16.msra.mxu0 %v221_v7 }
  0x2c   :  { %127 = vmatmul.bf16.vlgmr.msra.gmra.mxu0 %v220_v8 }
  0xa9   :  { %v128_v10 = vpop.f32.mrf.mxu0 }
  0xaa   :  { %v158_v11 = vadd.f32 %v236_v9, %v128_v10 }
  0xac   :  { %v160_v12 = vmax.f32 %v158_v11, 0.0 }
  0xae   :  { %162 = vst [vmem:[#allocation7] sm:$0xff] %v160_v12 }
  0xb1   :  { %v130_v13 = vpop.f32.mrf.mxu0 }
  0xb2   :  { %v159_v14 = vadd.f32 %v236_v9, %v130_v13 }
  0xb4   :  { %v161_v15 = vmax.f32 %v159_v14, 0.0 }
  0xb6   :  { %163 = vst [vmem:[#allocation7 + $0x8] sm:$0xff] %v161_v15 }
  0xb7   :  { %176 = dma.vmem_to_hbm [thread:$0]  %s169_s25, 256, %s171_s28, [#allocation4], %s320_s29, %s320_s29, %s321_s30  }
  0xb8   :  { %313 = dma.done.wait [#allocation4], 256  }
  0xb9   :  { %314 = vsyncadd [#allocation4], 4294967040 }
  0xba   :  { %181 = vsyncpa [#allocation3], 1 }
  0xbb   :  { %182 = vsyncpa [#allocation6], 1 }
  0xbc   :  { %183 = vsyncpa [#allocation4], 1 }

</bundles_post_ra>
